<compile_context>
chip_gen: v7x
topology: tpu7x:2x2x1
jax: 0.10.0
libtpu: 0.0.40
codegen_flags: <defaults>
</compile_context>

<pallas_src>
import jax
import jax.numpy as jnp
import numpy as np
from jax.experimental import pallas as pl
from jax.experimental.pallas import tpu as pltpu

B = 2          # demo batch
LATENT = 32    # latent_dim
L = 16         # out_dim[0]; with k=3, s=1, p=1 lengths are preserved each layer
CH = (8, 4, 2) # in_channels
K = 3          # conv_k
PAD = 1        # conv_p
HPAD = 128     # fused hidden width padded to a full lane tile


# ----------------------------------------------------------------------------
# Kernel
# ----------------------------------------------------------------------------
def decoder_kernel(x_ref, wf1_ref, bf1_ref, wt2_ref, bt2_ref, out_ref):
    """out = tanh(relu(relu(x @ Wf1 + bf1) @ Wt2 + bt2)), stored as (B, C, L)."""
    x = x_ref[...]                                                   # (BT, LATENT)
    h1 = jnp.dot(x, wf1_ref[...], preferred_element_type=jnp.float32) + bf1_ref[...]
    h1 = jnp.maximum(h1, 0.0)                                        # (BT, HPAD)
    h2 = jnp.dot(h1, wt2_ref[...], preferred_element_type=jnp.float32) + bt2_ref[...]
    y = jnp.tanh(jnp.maximum(h2, 0.0))                               # (BT, CH2*L)
    # columns are already NCL-flat (c*L + l): emit directly in (B, C, L)
    for c in range(CH[-1]):
        out_ref[:, c, :] = y[:, c * L:(c + 1) * L]


# ----------------------------------------------------------------------------
# One-time parameter preparation (host-side, numpy)
# ----------------------------------------------------------------------------
def _deconv_toeplitz(w, b):
    """ConvTranspose1d(cin,cout,K; stride=1, padding=PAD) on length-L maps as a
    dense (cin*L, cout*L) matrix acting on NCL-flattened activations."""
    cin, cout, kk = w.shape
    T = np.zeros((cin * L, cout * L), np.float32)
    for c0 in range(cin):
        for c1 in range(cout):
            for o in range(L):
                for i in range(L):
                    k = o + PAD - i
                    if 0 <= k < kk:
                        T[c0 * L + i, c1 * L + o] = w[c0, c1, k]
    return T, np.repeat(b, L)                       # bias tiled per output column


def prepare_params(params):
    """Fuse fc + deconv1 into (Wf1, bf1) and deconv2 into (Wt2, bt2). Run once."""
    fc_w, fc_b, w1, b1, w2, b2 = [np.asarray(p, np.float32) for p in params]
    T1, tb1 = _deconv_toeplitz(w1, b1)              # (CH0*L, CH1*L), (CH1*L,)
    T2, tb2 = _deconv_toeplitz(w2, b2)              # (CH1*L, CH2*L), (CH2*L,)

    Wf1 = fc_w.T @ T1                               # (LATENT, CH1*L)
    bf1 = fc_b @ T1 + tb1                           # (CH1*L,)

    h1w = CH[1] * L
    # pad fused hidden dim to 128 lanes (lane-dense intermediate; zeros are inert)
    Wf1p = np.zeros((LATENT, HPAD), np.float32); Wf1p[:, :h1w] = Wf1
    bf1p = np.zeros((1, HPAD), np.float32);      bf1p[:, :h1w] = bf1
    T2p = np.zeros((HPAD, CH[2] * L), np.float32); T2p[:h1w, :] = T2
    bt2p = tb2[None, :]                             # (1, CH2*L)
    return tuple(jnp.asarray(a) for a in (Wf1p, bf1p, T2p, bt2p))


# ----------------------------------------------------------------------------
# Wrapper
# ----------------------------------------------------------------------------
def decoder_forward(x, prep, *, batch_tile=256):
    """x: (B, LATENT); prep = prepare_params(params). Returns NCL (B, CH[-1], L)."""
    wf1, bf1, wt2, bt2 = prep
    bx = x.shape[0]
    out_shape = jax.ShapeDtypeStruct((bx, CH[-1], L), jnp.float32)

    if bx % batch_tile == 0 and bx // batch_tile > 1:
        # batch-tiled grid; "parallel" lets v7x shard tiles across its 2 TCs
        def full(a):
            return pl.BlockSpec(a.shape, lambda i: (0,) * a.ndim)
        return pl.pallas_call(
            decoder_kernel,
            out_shape=out_shape,
            grid=(bx // batch_tile,),
            in_specs=[pl.BlockSpec((batch_tile, LATENT), lambda i: (i, 0)),
                      full(wf1), full(bf1), full(wt2), full(bt2)],
            out_specs=pl.BlockSpec((batch_tile, CH[-1], L), lambda i: (i, 0, 0)),
            compiler_params=pltpu.CompilerParams(
                dimension_semantics=("parallel",)),
        )(x, wf1, bf1, wt2, bt2)

    # tiny batch: one grid-less call, whole problem resident in VMEM
    vmem = pl.BlockSpec(memory_space=pltpu.MemorySpace.VMEM)
    return pl.pallas_call(
        decoder_kernel,
        out_shape=out_shape,
        in_specs=[vmem] * 5,
        out_specs=vmem,
    )(x, wf1, bf1, wt2, bt2)


# ----------------------------------------------------------------------------
# Parameters & reference
# ----------------------------------------------------------------------------
def init_params(key):
    ks = jax.random.split(key, 6)

    def unif(k, shape, fan_in):
        bound = 1.0 / np.sqrt(fan_in)
        return jax.random.uniform(k, shape, jnp.float32, -bound, bound)

    fc_w = unif(ks[0], (CH[0] * L, LATENT), LATENT)   # torch Linear weight (out, in)
    fc_b = unif(ks[1], (CH[0] * L,), LATENT)
    w1 = unif(ks[2], (CH[0], CH[1], K), CH[0] * K)    # torch ConvTranspose1d (cin, cout, K)
    b1 = unif(ks[3], (CH[1],), CH[0] * K)
    w2 = unif(ks[4], (CH[1], CH[2], K), CH[1] * K)
    b2 = unif(ks[5], (CH[2],), CH[1] * K)
    return fc_w, fc_b, w1, b1, w2, b2


def ref_forward(x, params):
    """Pure numpy reference reproducing the PyTorch forward pass."""
    fc_w, fc_b, w1, b1, w2, b2 = [np.asarray(p, np.float32) for p in params]
    x = np.asarray(x, np.float32)
    h = x @ fc_w.T + fc_b
    h = h.reshape(x.shape[0], CH[0], L)               # x.view(B, in_channels[0], -1)

    def deconv(h, w, b):
        cin, cout, kk = w.shape
        out = np.zeros((h.shape[0], cout, L), np.float32)
        for o in range(L):
            for k in range(kk):
                i = o + PAD - k                        # stride=1, padding=1
                if 0 <= i < L:
                    out[:, :, o] += h[:, :, i] @ w[:, :, k]
        return out + b[None, :, None]

    h = np.maximum(deconv(h, w1, b1), 0.0)
    h = np.maximum(deconv(h, w2, b2), 0.0)
    return np.tanh(h)


if __name__ == "__main__":
    key = jax.random.PRNGKey(0)
    kx, kp, kx2 = jax.random.split(key, 3)
    params = init_params(kp)
    prep = prepare_params(params)                     # one-time fused weight prep

    # Small demo batch (matches module usage): grid-less path.
    x = jax.random.normal(kx, (B, LATENT), jnp.float32)
    out = jax.block_until_ready(decoder_forward(x, prep))
    assert out.shape == (B, CH[-1], L), out.shape
    np.testing.assert_allclose(np.asarray(out), ref_forward(x, params),
                               rtol=1e-4, atol=1e-4)

    # Larger batch exercises the batch-tiled "parallel" grid path.
    xb = jax.random.normal(kx2, (512, LATENT), jnp.float32)
    outb = jax.block_until_ready(decoder_forward(xb, prep, batch_tile=256))
    np.testing.assert_allclose(np.asarray(outb), ref_forward(xb, params),
                               rtol=1e-4, atol=1e-4)

    print("KERNEL_OK")
</pallas_src>

<mosaic_0001>
module attributes {stable_mosaic.version = 11 : i64} {
  func.func @decoder_kernel(%arg0: memref<2x32xf32, #tpu.memory_space<vmem>>, %arg1: memref<32x128xf32, #tpu.memory_space<vmem>>, %arg2: memref<1x128xf32, #tpu.memory_space<vmem>>, %arg3: memref<128x32xf32, #tpu.memory_space<vmem>>, %arg4: memref<1x32xf32, #tpu.memory_space<vmem>>, %arg5: memref<2x2x16xf32, #tpu.memory_space<vmem>>) attributes {dimension_semantics = [], scalar_prefetch = 0 : i64, scratch_operands = 0 : i64, tpu.core_type = #tpu.core_type<tc>} {
    %c0 = arith.constant 0 : index
    %c0_0 = arith.constant 0 : index
    %0 = vector.load %arg0[%c0, %c0_0] : memref<2x32xf32, #tpu.memory_space<vmem>>, vector<2x32xf32>
    %c0_1 = arith.constant 0 : index
    %c0_2 = arith.constant 0 : index
    %1 = vector.load %arg1[%c0_1, %c0_2] : memref<32x128xf32, #tpu.memory_space<vmem>>, vector<32x128xf32>
    %cst = arith.constant dense<0.000000e+00> : vector<2x128xf32>
    %2 = tpu.matmul %0, %1, %cst {dimension_numbers = #tpu.dot_dimension_numbers<[1], [0], [0], [1], [0, 0, 1, 1], [], []>} : vector<2x32xf32>, vector<32x128xf32>, vector<2x128xf32> -> vector<2x128xf32>
    %c0_3 = arith.constant 0 : index
    %c0_4 = arith.constant 0 : index
    %3 = vector.load %arg2[%c0_3, %c0_4] : memref<1x128xf32, #tpu.memory_space<vmem>>, vector<1x128xf32>
    %4 = vector.broadcast %3 : vector<1x128xf32> to vector<2x128xf32>
    %5 = arith.addf %2, %4 : vector<2x128xf32>
    %cst_5 = arith.constant 0.000000e+00 : f32
    %6 = vector.broadcast %cst_5 : f32 to vector<2x128xf32>
    %7 = arith.maximumf %5, %6 : vector<2x128xf32>
    %c0_6 = arith.constant 0 : index
    %c0_7 = arith.constant 0 : index
    %8 = vector.load %arg3[%c0_6, %c0_7] : memref<128x32xf32, #tpu.memory_space<vmem>>, vector<128x32xf32>
    %cst_8 = arith.constant dense<0.000000e+00> : vector<2x32xf32>
    %9 = tpu.matmul %7, %8, %cst_8 {dimension_numbers = #tpu.dot_dimension_numbers<[1], [0], [0], [1], [0, 0, 1, 1], [], []>} : vector<2x128xf32>, vector<128x32xf32>, vector<2x32xf32> -> vector<2x32xf32>
    %c0_9 = arith.constant 0 : index
    %c0_10 = arith.constant 0 : index
    %10 = vector.load %arg4[%c0_9, %c0_10] : memref<1x32xf32, #tpu.memory_space<vmem>>, vector<1x32xf32>
    %11 = vector.broadcast %10 : vector<1x32xf32> to vector<2x32xf32>
    %12 = arith.addf %9, %11 : vector<2x32xf32>
    %cst_11 = arith.constant 0.000000e+00 : f32
    %13 = vector.broadcast %cst_11 : f32 to vector<2x32xf32>
    %14 = arith.maximumf %12, %13 : vector<2x32xf32>
    %15 = math.tanh %14 : vector<2x32xf32>
    %16 = vector.extract_strided_slice %15 {offsets = [0, 0], sizes = [2, 16], strides = [1, 1]} : vector<2x32xf32> to vector<2x16xf32>
    %c0_12 = arith.constant 0 : index
    %c0_13 = arith.constant 0 : index
    %c0_14 = arith.constant 0 : index
    %17 = vector.load %arg5[%c0_12, %c0_13, %c0_14] : memref<2x2x16xf32, #tpu.memory_space<vmem>>, vector<2x1x16xf32>
    %18 = vector.shape_cast %17 : vector<2x1x16xf32> to vector<2x16xf32>
    %19 = vector.shape_cast %16 : vector<2x16xf32> to vector<2x1x16xf32>
    tpu.vector_store %arg5[%c0_12, %c0_13, %c0_14], %19 {strides = array<i32>} : memref<2x2x16xf32, #tpu.memory_space<vmem>>, vector<2x1x16xf32>,
    %20 = vector.extract_strided_slice %15 {offsets = [0, 16], sizes = [2, 16], strides = [1, 1]} : vector<2x32xf32> to vector<2x16xf32>
    %c0_15 = arith.constant 0 : index
    %c1 = arith.constant 1 : index
    %c0_16 = arith.constant 0 : index
    %21 = vector.load %arg5[%c0_15, %c1, %c0_16] : memref<2x2x16xf32, #tpu.memory_space<vmem>>, vector<2x1x16xf32>
    %22 = vector.shape_cast %21 : vector<2x1x16xf32> to vector<2x16xf32>
    %23 = vector.shape_cast %20 : vector<2x16xf32> to vector<2x1x16xf32>
    tpu.vector_store %arg5[%c0_15, %c1, %c0_16], %23 {strides = array<i32>} : memref<2x2x16xf32, #tpu.memory_space<vmem>>, vector<2x1x16xf32>,
    return
  }
}

</mosaic_0001>

<bundles_post_ra>
// kernel: tpu_custom_call.1
= control target key start
LH: loop header
LB: loop body
LE: loop exit
PB: predicated region body
PF: predicated region fallthrough
CT: control target
= control target key end

     0   :  { %v398_v3 = vmov 0.0|0.0   ;;  %vm399_vm0 = vmmov 0   ;;  %v400_v6 = vmov 0.0   ;;  %s521_s0 = inlined_call_operand.vmem [shape: f32[2,32], index: 0, kind: input, shape index: {}]   ;;  %s522_s1 = inlined_call_operand.vmem [shape: f32[32,128], index: 1, kind: input, shape index: {}]   ;;  %s523_s2 = inlined_call_operand.vmem [shape: f32[1,128], index: 2, kind: input, shape index: {}]   ;;  %s524_s3 = inlined_call_operand.vmem [shape: f32[128,32], index: 3, kind: input, shape index: {}]   ;;  %s525_s4 = inlined_call_operand.vmem [shape: f32[1,32], index: 4, kind: input, shape index: {}]   ;;  %s526_s5 = inlined_call_operand.hbm [shape: f32[2,2,16], index: 5, kind: output, shape index: {}]  }
   0x1   :  { %v22_v0 = vld [vmem:[%s522_s1] sm:$0xff]  ;;  %v23_v1 = vld [vmem:[%s522_s1 + $0x8] sm:$0xff]  ;;  %v24_v2 = vld [vmem:[%s522_s1 + $0x10] sm:$0xff]  ;;  %334 = vmatprep.subr.bf16.mxu0 %v398_v3  ;;  %296 = vmatprep.mubr.msk.f32.mxu0 %vm399_vm0, %v400_v6 }
   0x2   :  { %v335_v4 = vpack.c.bf16 %v23_v1, %v22_v0  ;;  %v25_v5 = vld [vmem:[%s522_s1 + $0x18] sm:$0xff]  ;;  %v108_v7 = vld [vmem:[%s524_s3] sm:$0xff]  ;;  %340 = vmatprep.subr.bf16.mxu1 %v398_v3  ;;  %v109_v8 = vld [vmem:[%s524_s3 + $0x8] sm:$0xff]  ;;  %331 = vmatprep.mubr.msk.f32.mxu1 %vm399_vm0, %v400_v6 }
   0x3   :  { %v110_v9 = vld [vmem:[%s524_s3 + $0x10] sm:$0xff]  ;;  %v111_v10 = vld [vmem:[%s524_s3 + $0x18] sm:$0xff]  ;;  %v338_v11 = vpack.c.bf16 %v25_v5, %v24_v2  ;;  %v341_v12 = vpack.c.bf16 %v109_v8, %v108_v7  ;;  %v112_v14 = vld [vmem:[%s524_s3 + $0x20] sm:$0xff] }
   0x4   :  { %336 = vmatpush3.bf16.msra.mxu0 %v335_v4  ;;  %v344_v13 = vpack.c.bf16 %v111_v10, %v110_v9  ;;  %v113_v15 = vld [vmem:[%s524_s3 + $0x28] sm:$0xff] }
   0x5   :  { %337 = vmatprep.subr.bf16.mxu0 %v398_v3  ;;  %342 = vmatpush3.bf16.msra.mxu1 %v341_v12 }
   0x6   :  { %343 = vmatprep.subr.bf16.mxu1 %v398_v3 }
   0x7   :  { %10 = vsyncpa [#allocation3], 0  ;;  %v21_v16 = vld [vmem:[%s521_s0] sm:$0x3]  ;;  %vm33_vm1 = vcmask 261120   ;;  %v347_v17 = vpack.c.bf16 %v113_v15, %v112_v14  ;;  %v114_v18 = vld [vmem:[%s524_s3 + $0x30] sm:$0xff]  ;;  %v207_v45 = vlaneseq }
   0x8   :  { %339 = vmatpush3.bf16.msra.mxu0 %v338_v11  ;;  %v115_v19 = vld [vmem:[%s524_s3 + $0x38] sm:$0xff]  ;;  %v116_v21 = vld [vmem:[%s524_s3 + $0x40] sm:$0xff]  ;;  %v117_v22 = vld [vmem:[%s524_s3 + $0x48] sm:$0xff]  ;;  %v401_v43 = vmov 1966171168   ;;  %vm228_vm2 = vcmask 122880  }
   0x9   :  { %345 = vmatpush3.bf16.msra.mxu1 %v344_v13  ;;  %v350_v20 = vpack.c.bf16 %v115_v19, %v114_v18  ;;  %v353_v23 = vpack.c.bf16 %v117_v22, %v116_v21  ;;  %v118_v24 = vld [vmem:[%s524_s3 + $0x50] sm:$0xff]  ;;  %v119_v25 = vld [vmem:[%s524_s3 + $0x58] sm:$0xff]  ;;  %v120_v27 = vld [vmem:[%s524_s3 + $0x60] sm:$0xff]  ;;  %v205_v44 = vunpack.c.l.s4 %v401_v43  ;;  %v208_v47 = vshrl.u32 %v207_v45, 7 }
   0xa   :  { %346 = vmatprep.subr.bf16.mxu1 %v398_v3  ;;  %v356_v26 = vpack.c.bf16 %v119_v25, %v118_v24  ;;  %v121_v28 = vld [vmem:[%s524_s3 + $0x68] sm:$0xff]  ;;  %v122_v30 = vld [vmem:[%s524_s3 + $0x70] sm:$0xff]  ;;  %v123_v31 = vld [vmem:[%s524_s3 + $0x78] sm:$0xff]  ;;  %s403_s3 = smov [#allocation2]  }
   0xb   :  { %297 = vmatmul.mubr.msk.f32.vlgmr.msra.gmra.mrb[0].mxu0 %vm33_vm1, %v21_v16  ;;  %v359_v29 = vpack.c.bf16 %v121_v28, %v120_v27  ;;  %v362_v32 = vpack.c.bf16 %v123_v31, %v122_v30  ;;  %v263_v33 = vld [vmem:[%s523_s2] ss:$0 sm:$0xff]  ;;  %v206_v46 = vunpack.c.0.s8 %v205_v44  ;;  %v233_v51 = vsub.s32 0, %v208_v47  ;;  %s402_s2 = smov 112  }
   0xc   :  { %v265_v38 = vld [vmem:[%s525_s4] ss:$0 sm:$0xff]  ;;  %s252_s4 = sshll.u32 %s403_s3, 4  ;;  %s253_s4 = int_to_ptr.vmem [resolvable:$true] %s252_s4 }
   0xd   :  { %348 = vmatpush3.bf16.msra.mxu1 %v347_v17  ;;  %v209_v48 = vsub.s32 %v206_v46, %v208_v47  ;;  %s374_s11 = scalar_lea.vmem %s253_s4, 64  ;;  %p379_p1 = scmp.lt.s32.totalorder %s253_s4, %s253_s4 }
   0xe   :  { %349 = vmatprep.subr.bf16.mxu1 %v398_v3  ;;  %p375_p0 = scmp.ne.s32.totalorder %s253_s4, %s374_s11  ;;  %p380_p2 = scmp.lt.s32.totalorder %s374_s11, %s374_s11 }
  0x10   :  { %p381_p3 = por %p380_p2, %p379_p1 }
  0x11   :  { %351 = vmatpush3.bf16.msra.mxu1 %v350_v20 }
  0x12   :  { %352 = vmatprep.subr.bf16.mxu1 %v398_v3  ;;  %p382_p4 = pnand %p381_p3, %p375_p0 }
  0x15   :  { %354 = vmatpush3.bf16.msra.mxu1 %v353_v23 }
  0x16   :  { %355 = vmatprep.subr.bf16.mxu1 %v398_v3 }
  0x19   :  { %357 = vmatpush3.bf16.msra.mxu1 %v356_v26 }
  0x1a   :  { %358 = vmatprep.subr.bf16.mxu1 %v398_v3 }
  0x1d   :  { %360 = vmatpush3.bf16.msra.mxu1 %v359_v29 }
  0x1e   :  { %361 = vmatprep.subr.bf16.mxu1 %v398_v3 }
  0x21   :  { %363 = vmatpush3.bf16.msra.mxu1 %v362_v32 }
  0xde   :  { %v103_v34 = vpop.f32.mrb[0].mxu0 }
  0xdf   :  { %v104_v35 = vadd.f32 %v263_v33, %v103_v34  ;;  %v298_v36 = vpop.f32.mrb[1].mxu0 }
  0xe1   :  { %v107_v37 = vmax.f32 %v104_v35, 0.0 }
  0xe3   :  { %332 = vmatmul.mubr.f32.vlgmr.msra.gmra.mrb[0].mxu1 %v107_v37 }
 0x1b6   :  { %v197_v39 = vpop.f32.mrb[0].mxu1 }
 0x1b7   :  { %v198_v40 = vadd.f32 %v265_v38, %v197_v39  ;;  %v333_v41 = vpop.f32.mrb[1].mxu1 }
 0x1b9   :  { %v201_v42 = vmax.f32 %v198_v40, 0.0 }
 0x1bb   :  { %372 = vtanh.f32 %v201_v42 }
 0x1c5   :  { %v373_v49 = vpop.eup %372 }
 0x1c6   :  { %v210_v50 = vrot.slane %v373_v49, %v209_v48 }
 0x1c8   :  { %v218_v52 = vrot.slane %v210_v50, %v209_v48  ;;  %v211_v53 = vcombine.high %v210_v50, %v210_v50 }
 0x1ca   :  { %v234_v54 = vrot.slane %v218_v52, %v233_v51  ;;  %v225_v55 = vrot.slane %v211_v53, %v209_v48  ;;  %229 = vst.msk [vmem:[#allocation2] sm:$0x1] %vm228_vm2, %v218_v52 }
 0x1cc   :  { %239 = vrot.lane.b32.xlu0 %v234_v54, %s402_s2  ;;  %230 = vst.msk [vmem:[#allocation2 + $0x2] sm:$0x1] %vm228_vm2, %v225_v55  ;;  %v238_v56 = vrot.slane %v225_v55, %v233_v51 }
 0x1d0   :  { %241 = vrot.lane.b32.xlu0 %v238_v56, %s402_s2 }
 0x23e   :  { %v240_v57 = vpop.permute.xlu0 %239 }
 0x23f   :  { %245 = vst.msk [vmem:[#allocation2 + $0x1] sm:$0x1] %vm228_vm2, %v240_v57 }
 0x242   :  { %v242_v58 = vpop.permute.xlu0 %241 }
 0x243   :  { %246 = vst.msk [vmem:[#allocation2 + $0x3] sm:$0x1] %vm228_vm2, %v242_v58 }
 0x244   :  { %385 = shalt.err (!%p382_p4)
}
 0x245   :  { %s386_s14 = scalar_lea.hbm %s526_s5, 64 }
 0x246   :  { %p387_p5 = scmp.ne.s32.totalorder %s526_s5, %s386_s14  ;;  %p390_p6 = scmp.lt.u32.totalorder %s386_s14, %s526_s5 }
 0x248   :  { %p392_p7 = pnand %p390_p6, %p387_p5 }
 0x24a   :  { %395 = shalt.err (!%p392_p7)
}
 0x24b   :  { %s404_s19 = smov 32   ;;  %s405_s0 = smov 2  }
 0x24c   :  { %258 = dma.vmem_to_hbm [thread:$0]  %s253_s4, 64, %s526_s5, [#allocation3], %s404_s19, %s404_s19, %s405_s0  }
 0x24d   :  { %396 = dma.done.wait [#allocation3], 64  }
 0x24e   :  { %397 = vsyncadd [#allocation3], 4294967232 }
 0x24f   :  { %262 = vsyncpa [#allocation3], 1 }

</bundles_post_ra>
